<compile_context>
chip_gen: v6e
topology: v6e:2x2x1
jax: 0.10.0
libtpu: 0.0.40
codegen_flags: <defaults>
</compile_context>

<pallas_src>
import jax
import jax.numpy as jnp
from jax.experimental import pallas as pl
from jax.experimental.pallas import tpu as pltpu


def _round_up(x, m):
    return ((x + m - 1) // m) * m


def _pick_tile(total, target, align):
    """Largest multiple of `align` that divides `total` and is <= target (else `total`)."""
    if total <= target or total % align != 0:
        return total
    t = (target // align) * align
    while t >= align:
        if total % t == 0:
            return t
        t -= align
    return total


def _usable_vmem_bytes():
    """Generation-aware usable VMEM (leave headroom for Mosaic internal scratch/semaphores)."""
    try:
        cap = int(getattr(pltpu.get_tpu_info(), "vmem_capacity_bytes", 64 << 20))
    except Exception:
        cap = 64 << 20
    return max(min(cap - (12 << 20), int(cap * 0.85)), 24 << 20)


def _make_swiglu_kernel(acc_is_out):
    def kernel(x_ref, w13_ref, w2_ref, o_ref, *scratch):
        # x_ref:   (tm, H)     token tile (compute dtype)
        # w13_ref: (H, 2*ti)   fused [gate | up] weight tile, pre-transposed (NN matmul)
        # w2_ref:  (ti, H)     down-proj tile, pre-transposed (NN matmul)
        # o_ref:   (tm, H)     output tile (revisited across the I axis)
        acc_ref = o_ref if acc_is_out else scratch[0]
        i = pl.program_id(1)

        @pl.when(i == 0)
        def _():
            acc_ref[...] = jnp.zeros_like(acc_ref)

        x = x_ref[...]
        gu = jnp.dot(x, w13_ref[...], preferred_element_type=jnp.float32)   # (tm, 2*ti)
        ti = gu.shape[-1] // 2
        g = gu[:, :ti]                                                       # lane-aligned slice
        u = gu[:, ti:]
        h = (g * jax.nn.sigmoid(g)) * u                                      # SiLU * up in fp32
        acc_ref[...] += jnp.dot(h.astype(x.dtype), w2_ref[...],
                                preferred_element_type=jnp.float32)          # (tm, H)

        if not acc_is_out:
            @pl.when(i == pl.num_programs(1) - 1)
            def _():
                o_ref[...] = acc_ref[...].astype(o_ref.dtype)

    return kernel


def swiglu_mlp(x, w1, w3, w2, *, tm=512, ti=512, compute_dtype="auto"):
    """x: (..., H); w1, w3: (I, H); w2: (H, I) — exact nn.Linear weight layouts.

    compute_dtype: dtype fed to the MXU; "auto" -> bfloat16 when x is float32.
    Accumulation and the SiLU stay fp32; the result is returned in x.dtype.
    """
    orig_shape = x.shape
    out_dtype = x.dtype
    H = orig_shape[-1]
    I = w1.shape[0]
    xm = x.reshape(-1, H)
    M = xm.shape[0]

    if compute_dtype == "auto":
        compute_dtype = jnp.bfloat16 if out_dtype == jnp.float32 else out_dtype
    cdt = jnp.dtype(compute_dtype)
    cs = cdt.itemsize
    os_ = jnp.dtype(out_dtype).itemsize

    # ---- tile sizing -------------------------------------------------------
    sub = 8 if cs >= 4 else (16 if cs == 2 else 32)        # packed sublane multiple
    usable = _usable_vmem_bytes()
    acc_is_out = (out_dtype == jnp.float32)                # accumulate straight into o_ref

    # Token tile: keep >= 2 m-tiles whenever possible so the "parallel" axis
    # can shard across both v7x TensorCores; clamp + align for small M.
    if M > tm:
        tm_eff = _round_up(tm, sub)
    else:
        half = _round_up(-(-M // 2), sub)
        tm_eff = half if half < M else _round_up(M, sub)

    ti_eff = _pick_tile(I, ti, 128)

    def vmem_needed(tm_, ti_):
        # double-buffered x + fused w13 + w2t + out blocks (+ fp32 acc if separate)
        blocks = tm_ * H * cs + 3 * ti_ * H * cs + tm_ * H * os_
        acc = 0 if acc_is_out else tm_ * H * 4
        return 2 * blocks + acc + (2 << 20)

    # Shrink ti, then tm, until the working set fits the usable VMEM budget.
    while vmem_needed(tm_eff, ti_eff) > usable and ti_eff > 128:
        nxt = _pick_tile(I, ti_eff - 128, 128)
        if nxt >= ti_eff:
            break
        ti_eff = nxt
    while vmem_needed(tm_eff, ti_eff) > usable and tm_eff > 2 * sub:
        tm_eff = max(_round_up(tm_eff // 2, sub), sub)

    grid_m = pl.cdiv(M, tm_eff)        # ragged last m-tile -> masked stores (no jnp.pad / slice)
    grid_i = I // ti_eff

    # ---- one-time weight prep: NN layout, gate/up fused per I-tile ---------
    # (In a real model these casts/transposes are hoisted to parameter init.)
    w1c = w1.astype(cdt).reshape(grid_i, ti_eff, H)
    w3c = w3.astype(cdt).reshape(grid_i, ti_eff, H)
    w13 = jnp.concatenate([w1c, w3c], axis=1)               # (nI, 2*ti, H)
    w13 = jnp.transpose(w13, (2, 0, 1)).reshape(H, 2 * I)   # (H, 2*I): column block i = [gate_i | up_i]
    w2t = w2.astype(cdt).T                                   # (I, H)
    xm = xm.astype(cdt)

    vmem_limit = int(min(max(vmem_needed(tm_eff, ti_eff), 32 << 20), usable))

    cost = pl.CostEstimate(
        flops=6 * M * H * I,                       # three matmuls
        transcendentals=M * I,                     # sigmoid
        bytes_accessed=(M * H * cs                 # activations in
                        + grid_m * 3 * I * H * cs  # weights re-streamed once per m-tile
                        + M * H * os_),            # output
    )

    scratch = [] if acc_is_out else [pltpu.VMEM((tm_eff, H), jnp.float32)]

    out = pl.pallas_call(
        _make_swiglu_kernel(acc_is_out),
        out_shape=jax.ShapeDtypeStruct((M, H), out_dtype),
        grid_spec=pltpu.PrefetchScalarGridSpec(
            num_scalar_prefetch=0,
            grid=(grid_m, grid_i),
            in_specs=[
                pl.BlockSpec((tm_eff, H), lambda m, i: (m, 0)),         # x tile
                pl.BlockSpec((H, 2 * ti_eff), lambda m, i: (0, i)),     # fused w1|w3 (transposed)
                pl.BlockSpec((ti_eff, H), lambda m, i: (i, 0)),         # w2 (transposed)
            ],
            out_specs=pl.BlockSpec((tm_eff, H), lambda m, i: (m, 0)),
            scratch_shapes=scratch,
        ),
        compiler_params=pltpu.CompilerParams(
            dimension_semantics=("parallel", "arbitrary"),
            vmem_limit_bytes=vmem_limit,
        ),
        cost_estimate=cost,
    )(xm, w13, w2t)

    return out.reshape(orig_shape)


def _ref(x, w1, w3, w2):
    g = x @ w1.T
    u = x @ w3.T
    return (g * jax.nn.sigmoid(g) * u) @ w2.T


if __name__ == "__main__":
    # small config consistent with the module: hidden_size=128, intermediate_size=256
    batch, seq, hidden, inter = 2, 8, 128, 256

    key = jax.random.PRNGKey(0)
    kx, k1, k3, k2, kx2 = jax.random.split(key, 5)

    x = jax.random.normal(kx, (batch, seq, hidden), dtype=jnp.float32)
    # nn.Linear weight layout: (out_features, in_features)
    w1 = jax.random.normal(k1, (inter, hidden), dtype=jnp.float32) * 0.02
    w3 = jax.random.normal(k3, (inter, hidden), dtype=jnp.float32) * 0.02
    w2 = jax.random.normal(k2, (hidden, inter), dtype=jnp.float32) * 0.02

    # 1) fp32 compute path (tight tolerance); two m-tiles, single i-step
    out = swiglu_mlp(x, w1, w3, w2, compute_dtype=jnp.float32)
    jax.block_until_ready(out)
    ref = _ref(x, w1, w3, w2)
    assert out.shape == ref.shape == (batch, seq, hidden)
    assert jnp.allclose(out, ref, atol=1e-4, rtol=1e-4), float(jnp.max(jnp.abs(out - ref)))

    # 2) default path (bf16 MXU inputs, fp32 accumulation into o_ref):
    #    ragged token count (M=300) + two I-steps
    x2 = jax.random.normal(kx2, (3, 100, hidden), dtype=jnp.float32)
    out2 = swiglu_mlp(x2, w1, w3, w2, ti=128)
    jax.block_until_ready(out2)
    ref2 = _ref(x2, w1, w3, w2)
    assert out2.shape == ref2.shape
    assert jnp.allclose(out2, ref2, atol=5e-3, rtol=5e-2), float(jnp.max(jnp.abs(out2 - ref2)))

    # 3) bf16 end-to-end (bf16 output -> fp32 VMEM scratch accumulator path)
    x3 = x2.astype(jnp.bfloat16)
    out3 = swiglu_mlp(x3, w1.astype(jnp.bfloat16), w3.astype(jnp.bfloat16),
                      w2.astype(jnp.bfloat16), ti=128)
    jax.block_until_ready(out3)
    assert out3.dtype == jnp.bfloat16
    assert jnp.allclose(out3.astype(jnp.float32), ref2, atol=1e-2, rtol=1e-1), \
        float(jnp.max(jnp.abs(out3.astype(jnp.float32) - ref2)))

    print("KERNEL_OK")
</pallas_src>

<mosaic_0001>
module attributes {stable_mosaic.version = 11 : i64} {
  func.func @kernel(%arg0: i32, %arg1: i32, %arg2: memref<8x128xf32, #tpu.memory_space<vmem>>, %arg3: memref<128x512xf32, #tpu.memory_space<vmem>>, %arg4: memref<256x128xf32, #tpu.memory_space<vmem>>, %arg5: memref<8x128xf32, #tpu.memory_space<vmem>>) attributes {dimension_semantics = [#tpu.dimension_semantics<parallel>, #tpu.dimension_semantics<arbitrary>], iteration_bounds = array<i64: 2, 1>, scalar_prefetch = 0 : i64, scratch_operands = 0 : i64, tpu.core_type = #tpu.core_type<tc>, window_params = [{transform_indices = @transform_0, window_bounds = array<i64: 8, 128>}, {transform_indices = @transform_1, window_bounds = array<i64: 128, 512>}, {transform_indices = @transform_2, window_bounds = array<i64: 256, 128>}, {transform_indices = @transform_3, window_bounds = array<i64: 8, 128>}]} {
    %c0_i32 = arith.constant 0 : i32
    %0 = arith.cmpi eq, %arg1, %c0_i32 : i32
    %1 = arith.extui %0 : i1 to i32
    %c0_i32_0 = arith.constant 0 : i32
    %2 = arith.cmpi ne, %1, %c0_i32_0 : i32
    scf.if %2 {
      %cst_12 = arith.constant 0.000000e+00 : f32
      %20 = vector.broadcast %cst_12 : f32 to vector<8x128xf32>
      %c0_13 = arith.constant 0 : index
      %c0_14 = arith.constant 0 : index
      %21 = vector.load %arg5[%c0_13, %c0_14] : memref<8x128xf32, #tpu.memory_space<vmem>>, vector<8x128xf32>
      tpu.vector_store %arg5[%c0_13, %c0_14], %20 {strides = array<i32>} : memref<8x128xf32, #tpu.memory_space<vmem>>, vector<8x128xf32>,
    } else {
    }
    %c0 = arith.constant 0 : index
    %c0_1 = arith.constant 0 : index
    %3 = vector.load %arg2[%c0, %c0_1] : memref<8x128xf32, #tpu.memory_space<vmem>>, vector<8x128xf32>
    %c0_2 = arith.constant 0 : index
    %c0_3 = arith.constant 0 : index
    %4 = vector.load %arg3[%c0_2, %c0_3] : memref<128x512xf32, #tpu.memory_space<vmem>>, vector<128x512xf32>
    %cst = arith.constant dense<0.000000e+00> : vector<8x512xf32>
    %5 = tpu.matmul %3, %4, %cst {dimension_numbers = #tpu.dot_dimension_numbers<[1], [0], [0], [1], [0, 0, 1, 1], [], []>} : vector<8x128xf32>, vector<128x512xf32>, vector<8x512xf32> -> vector<8x512xf32>
    %6 = vector.extract_strided_slice %5 {offsets = [0, 0], sizes = [8, 256], strides = [1, 1]} : vector<8x512xf32> to vector<8x256xf32>
    %7 = vector.extract_strided_slice %5 {offsets = [0, 256], sizes = [8, 256], strides = [1, 1]} : vector<8x512xf32> to vector<8x256xf32>
    %8 = arith.negf %6 : vector<8x256xf32>
    %9 = math.exp %8 : vector<8x256xf32>
    %cst_4 = arith.constant 1.000000e+00 : f32
    %10 = vector.broadcast %cst_4 : f32 to vector<8x256xf32>
    %11 = arith.addf %10, %9 : vector<8x256xf32>
    %12 = arith.divf %10, %11 : vector<8x256xf32>
    %13 = arith.mulf %6, %12 : vector<8x256xf32>
    %14 = arith.mulf %13, %7 : vector<8x256xf32>
    %c0_5 = arith.constant 0 : index
    %c0_6 = arith.constant 0 : index
    %15 = vector.load %arg5[%c0_5, %c0_6] : memref<8x128xf32, #tpu.memory_space<vmem>>, vector<8x128xf32>
    %c0_7 = arith.constant 0 : index
    %c0_8 = arith.constant 0 : index
    %16 = vector.load %arg4[%c0_7, %c0_8] : memref<256x128xf32, #tpu.memory_space<vmem>>, vector<256x128xf32>
    %cst_9 = arith.constant dense<0.000000e+00> : vector<8x128xf32>
    %17 = tpu.matmul %14, %16, %cst_9 {dimension_numbers = #tpu.dot_dimension_numbers<[1], [0], [0], [1], [0, 0, 1, 1], [], []>} : vector<8x256xf32>, vector<256x128xf32>, vector<8x128xf32> -> vector<8x128xf32>
    %18 = arith.addf %15, %17 : vector<8x128xf32>
    %c0_10 = arith.constant 0 : index
    %c0_11 = arith.constant 0 : index
    %19 = vector.load %arg5[%c0_10, %c0_11] : memref<8x128xf32, #tpu.memory_space<vmem>>, vector<8x128xf32>
    tpu.vector_store %arg5[%c0_10, %c0_11], %18 {strides = array<i32>} : memref<8x128xf32, #tpu.memory_space<vmem>>, vector<8x128xf32>,
    return
  }
  func.func @transform_0(%arg0: i32, %arg1: i32) -> (i32, i32) {
    %c0_i32 = arith.constant 0 : i32
    %c0_i32_0 = arith.constant 0 : i32
    return %arg0, %c0_i32 : i32, i32
  }
  func.func @transform_1(%arg0: i32, %arg1: i32) -> (i32, i32) {
    %c0_i32 = arith.constant 0 : i32
    %c0_i32_0 = arith.constant 0 : i32
    return %c0_i32, %arg1 : i32, i32
  }
  func.func @transform_2(%arg0: i32, %arg1: i32) -> (i32, i32) {
    %c0_i32 = arith.constant 0 : i32
    %c0_i32_0 = arith.constant 0 : i32
    return %arg1, %c0_i32 : i32, i32
  }
  func.func @transform_3(%arg0: i32, %arg1: i32) -> (i32, i32) {
    %c0_i32 = arith.constant 0 : i32
    %c0_i32_0 = arith.constant 0 : i32
    return %arg0, %c0_i32 : i32, i32
  }
}

</mosaic_0001>

<bundles_post_ra>
// kernel: tpu_custom_call.1
= control target key start
LH: loop header
LB: loop body
LE: loop exit
PB: predicated region body
PF: predicated region fallthrough
CT: control target
= control target key end

     0   :  { %8 = vsyncpa [#allocation3], 0  ;;  %s1219_s0 = inlined_call_operand.hbm [shape: f32[16,128], index: 0, kind: input, shape index: {}]   ;;  %s1220_s1 = inlined_call_operand.hbm [shape: f32[128,512], index: 1, kind: input, shape index: {}]   ;;  %s1221_s2 = inlined_call_operand.hbm [shape: f32[256,128], index: 2, kind: input, shape index: {}]   ;;  %s1222_s3 = inlined_call_operand.hbm [shape: f32[16,128], index: 3, kind: output, shape index: {}]  }
   0x1   :  { %10 = vsyncpa [#allocation3 + $0x1], 0 }
   0x2   :  { %11 = vsyncpa [#allocation6], 0 }
   0x3   :  { %12 = vsyncpa [#allocation4], 0 }
   0x4   :  { %14 = vsyncpa [#allocation4 + $0x1], 0  ;;  %s1038_s12 = smov 0   ;;  %s1040_s13 = smov 0  }
   0x5   :  { %s1042_s14 = smov 0   ;;  %s1044_s15 = smov 0  }
   0x6   :  { %s1046_s16 = smov 0   ;;  %s1048_s17 = smov 0  }
   0x7 LB: > { %s693_s18 = sadd.s32 4294967295, %s1007_s17   ;;  %s694_s19 = sadd.s32 4294967294, %s1007_s17   ;;  %s1007_s17 = sphi %s1048_s17, %s20_s17   ;;  %s1003_s16 = sphi %s1046_s16, %s1242_s16   ;;  %s999_s15 = sphi %s1044_s15, %s1241_s15   ;;  %s995_s14 = sphi %s1042_s14, %s1240_s14   ;;  %s991_s13 = sphi %s1040_s13, %s1239_s13   ;;  %s987_s12 = sphi %s1038_s12, %s1238_s12  }
   0x8   : > { %p52_p0 = scmp.ne.s32.totalorder %s991_s13, %s987_s12  ;;  %p1072_p1 = scmp.eq.s32.totalorder %s693_s18, 0 }
   0x9   : > { %p1076_p2 = scmp.eq.s32.totalorder %s693_s18, 1  ;;  %p134_p3 = scmp.eq.s32.totalorder %s694_s19, 1 }
   0xa   : > { %s1226_s20 = scalar_select %p1072_p1, 1, 0 }
   0xb   : > { %p1082_p4 = por %p1072_p1, %p52_p0  ;;  %p695_p5 = scmp.ge.s32.totalorder %s1007_s17, 1 }
   0xc   : > { %p1087_p6 = por %p134_p3, %p52_p0  ;;  %p141_p7 = scmp.lt.s32.totalorder %s1007_s17, 3 }
   0xd   : > { %s1228_s22 = scalar_select %p1082_p4, 1, 0 }
   0xe   : > { %s1229_s23 = scalar_select %p1087_p6, 1, 0 }
   0xf   : > { %p1092_p8 = pnand %p695_p5, %p141_p7  ;;  %s1009_s25 = smov [#allocation5]  }
  0x10   : > { %s156_s26 = sshll.u32 %s1009_s25, 4  ;;  %s1010_s28 = smov [#allocation7]   ;;  %s157_s26 = int_to_ptr.vmem [resolvable:$true] %s156_s26 }
  0x11   : > { %p759_p9 = pneg %p1092_p8  ;;  %s172_s29 = sshll.u32 %s1010_s28, 4  ;;  %s173_s29 = int_to_ptr.vmem [resolvable:$true] %s172_s29 }
  0x12   : > { %s854_s30 = scalar_lea.vmem %s157_s26, 8192  ;;  %p862_p5 = scmp.lt.s32.totalorder %s157_s26, %s157_s26 }
  0x13   : > { %p1101_p11 = pnand %p759_p9, %p1072_p1  ;;  %p855_p13 = scmp.ne.s32.totalorder %s157_s26, %s854_s30 }
  0x14   : > { %p863_p7 = scmp.lt.s32.totalorder %s854_s30, %s854_s30 }
  0x15   : > { %p845_p12 = pneg %p1101_p11 }
  0x16   : > { %p864_p10 = por %p863_p7, %p862_p5 }
  0x17   : > { %p857_p0 = pnand %p855_p13, %p845_p12 }
  0x19   : > { %p858_p3 = pneg %p857_p0 }
  0x1b   : > { %p865_p9 = pnand %p864_p10, %p858_p3 }
  0x1d   : > { %868 = shalt.err (!%p865_p9)
}
  0x1e   : > { %s1011_s4 = smov 512   ;;  %s1012_s5 = smov 32  }
  0x1f   : > { %762 = dma.hbm_to_vmem [thread:$0]  (!%p1101_p11), %s1220_s1, 8192, %s157_s26, [#allocation6], %s1011_s4, %s1011_s4, %s1012_s5  }
  0x20   : > { %s880_s8 = scalar_lea.vmem %s173_s29, 4096  ;;  %p888_p1 = scmp.lt.s32.totalorder %s173_s29, %s173_s29 }
  0x21   : > { %p881_p6 = scmp.ne.s32.totalorder %s173_s29, %s880_s8  ;;  %p889_p4 = scmp.lt.s32.totalorder %s880_s8, %s880_s8 }
  0x23   : > { %p883_p13 = pnand %p881_p6, %p845_p12  ;;  %p890_p5 = por %p889_p4, %p888_p1 }
  0x25   : > { %p884_p0 = pneg %p883_p13 }
  0x27   : > { %p891_p10 = pnand %p890_p5, %p884_p0 }
  0x29   : > { %894 = shalt.err (!%p891_p10)
}
  0x2a   : > { %s1013_s9 = smov 128   ;;  %s1014_s10 = smov 8  }
  0x2b   : > { %765 = dma.hbm_to_vmem [thread:$0]  (!%p1101_p11), %s1221_s2, 4096, %s173_s29, [#allocation6], %s1013_s9, %s1013_s9, %s1014_s10  }
  0x2c   : > { %s32_s19 = sadd.s32 1, %s1003_s16  ;;  %s39_s25 = sadd.s32 1, %s995_s14 }
  0x2d   : > { %p34_p1 = scmp.ge.s32.totalorder %s32_s19, 2  ;;  %p46_p4 = scmp.ne.s32.totalorder %s995_s14, %s991_s13 }
  0x2e   : > { %p47_p6 = scmp.eq.s32.totalorder %s1007_s17, 0  ;;  %p776_p12 = scmp.lt.s32.totalorder %s1007_s17, 2 }
  0x2f   : > { %s1244_s19 = smov (%p34_p1, %s32_s19), 0  ;;  %p1133_p7 = por %p1076_p2, %p46_p4 }
  0x30   : > { %p48_p3 = por %p47_p6, %p46_p4  ;;  %s36_s27 = ssub.s32 %s1003_s16, %s1244_s19 }
  0x31   : > { %s186_s28 = sand.u32 1, %s995_s14   ;;  %p37_p9 = scmp.eq.s32.totalorder %s36_s27, 0 }
  0x32   : > { %s699_s29 = sshll.u32 %s186_s28, 3  ;;  %s700_s30 = sshll.u32 %s1003_s16, 7 }
  0x33   : > { %s1142_s4 = scalar_select %p37_p9, %s995_s14, %s39_s25  }
  0x34   : > { %s195_s7 = scalar_lea.hbm %s1219_s0, %s700_s30  ;;  %s190_s8 = scalar_lea.vmem [#allocation2], %s699_s29 }
  0x35   : > { %s197_s9 = sshll.u32 %s190_s8, 4  ;;  %p1149_p11 = pnand %p776_p12, %p48_p3  ;;  %s198_s9 = int_to_ptr.vmem [resolvable:$true] %s197_s9 }
  0x36   : > { %s187_s10 = scalar_lea.sflag [#allocation3], %s186_s28  ;;  %s908_s11 = scalar_lea.vmem %s198_s9, 128 }
  0x37   : > { %p897_p2 = pneg %p1149_p11  ;;  %p909_p13 = scmp.ne.s32.totalorder %s198_s9, %s908_s11 }
  0x38   : > { %s1015_s18 = smov [#allocation2]  }
  0x39   : > { %p911_p0 = pnand %p909_p13, %p897_p2  ;;  %s913_s25 = sshll.u32 %s1015_s18, 4  ;;  %s914_s25 = int_to_ptr.vmem [resolvable:$false] %s913_s25 }
  0x3a   : > { %s915_s27 = scalar_lea.vmem %s914_s25, 256  ;;  %p916_p10 = scmp.lt.s32.totalorder %s198_s9, %s914_s25 }
  0x3b   : > { %p912_p5 = pneg %p911_p0  ;;  %p917_p1 = scmp.lt.s32.totalorder %s915_s27, %s908_s11 }
  0x3d   : > { %p918_p4 = por %p917_p1, %p916_p10 }
  0x3f   : > { %p919_p6 = pnand %p918_p4, %p912_p5 }
  0x41   : > { %922 = shalt.err (!%p919_p6)
}
  0x42   : > { %769 = dma.hbm_to_vmem [thread:$0]  (!%p1149_p11), %s195_s7, 128, %s198_s9, %s187_s10  }
  0x43   : > { %206 = sbr.rel (%p1092_p8) target bundleno = 552 (0x228), region = 32  ;;  %s1160_s28 = sand.u32 (!%p1092_p8), 1, %s991_s13  }
  0x44   : > { %s702_s29 = sshll.u32 (!%p1092_p8), %s1160_s28, 3  ;;  %s209_s30 = scalar_lea.sflag (!%p1092_p8), [#allocation3], %s1160_s28 }
  0x45   : > { %s1166_s5 = scalar_lea.vmem (!%p1092_p8), [#allocation2], %s702_s29  ;;  %p1234_p12 = scmp.ne.s32.totalorder (!%p1092_p8), %s1228_s22, 0 }
  0x48   : > { %974 = dma.done.wait (%p1234_p12), %s209_s30, 128  }
  0x49   : > { %976 = vsyncadd (%p1234_p12), %s209_s30, 4294967168  ;;  %p1235_p3 = scmp.ne.s32.totalorder %s1226_s20, 0 }
  0x4b   : > { %978 = dma.done.wait (%p1235_p3), [#allocation6], 12288  }
  0x4c   : > { %980 = vsyncadd (%p1235_p3), [#allocation6], 4294955008  ;;  %v1016_v0 = vmov 0.0   ;;  %v312_v1 = vld [vmem:[#allocation5 + $0x1e8] sm:$0xff]  ;;  %v311_v2 = vld [vmem:[#allocation5 + $0x1e0] sm:$0xff]  ;;  %s709_s20 = sshll.u32 %s999_s15, 7 }
  0x4d   : > { %379 = vmatprep.mubr.f32.mxu0 %v1016_v0  ;;  %450 = vmatprep.mubr.f32.mxu1 %v1016_v0  ;;  %v308_v3 = vld [vmem:[#allocation5 + $0x1c8] sm:$0xff]  ;;  %v307_v4 = vld [vmem:[#allocation5 + $0x1c0] sm:$0xff]  ;;  %v314_v15 = vld [vmem:[#allocation5 + $0x1f8] sm:$0xff]  ;;  %s242_s22 = scalar_lea.vmem [#allocation8], %s702_s29  ;;  %s590_s8 = scalar_lea.hbm %s1222_s3, %s709_s20 }
  0x4e   : > { %315 = vmatprep.subr.mxu0 %v312_v1  ;;  %v304_v5 = vld [vmem:[#allocation5 + $0x1a8] sm:$0xff]  ;;  %v303_v6 = vld [vmem:[#allocation5 + $0x1a0] sm:$0xff]  ;;  %v313_v16 = vld [vmem:[#allocation5 + $0x1f0] sm:$0xff]  ;;  %386 = vmatprep.subr.mxu1 %v314_v15  ;;  %s592_s24 = sshll.u32 %s242_s22, 4  ;;  %s579_s9 = scalar_lea.sflag [#allocation4], %s1160_s28  ;;  %s593_s24 = int_to_ptr.vmem [resolvable:$true] %s592_s24 }
  0x4f   : > { %316 = vmatpush1.msra.mxu0 %v311_v2  ;;  %v300_v7 = vld [vmem:[#allocation5 + $0x188] sm:$0xff]  ;;  %v299_v8 = vld [vmem:[#allocation5 + $0x180] sm:$0xff]  ;;  %v310_v17 = vld [vmem:[#allocation5 + $0x1d8] sm:$0xff]  ;;  %387 = vmatpush1.msra.mxu1 %v313_v16  ;;  %s923_s21 = scalar_lea.vmem %s593_s24, 128  ;;  %s1017_s10 = smov [#allocation8]  }
  0x50   : > { %317 = vmatprep.subr.mxu0 %v308_v3  ;;  %v296_v9 = vld [vmem:[#allocation5 + $0x168] sm:$0xff]  ;;  %v295_v10 = vld [vmem:[#allocation5 + $0x160] sm:$0xff]  ;;  %v309_v19 = vld [vmem:[#allocation5 + $0x1d0] sm:$0xff]  ;;  %388 = vmatprep.subr.mxu1 %v310_v17  ;;  %p924_p8 = scmp.ne.s32.totalorder %s593_s24, %s923_s21  ;;  %s927_s11 = sshll.u32 %s1017_s10, 4  ;;  %s928_s11 = int_to_ptr.vmem [resolvable:$false] %s927_s11 }
  0x51   : > { %318 = vmatpush1.msra.mxu0 %v307_v4  ;;  %v292_v11 = vld [vmem:[#allocation5 + $0x148] sm:$0xff]  ;;  %v291_v12 = vld [vmem:[#allocation5 + $0x140] sm:$0xff]  ;;  %v306_v21 = vld [vmem:[#allocation5 + $0x1b8] sm:$0xff]  ;;  %389 = vmatpush1.msra.mxu1 %v309_v19  ;;  %s929_s15 = scalar_lea.vmem %s928_s11, 256  ;;  %p930_p2 = scmp.lt.s32.totalorder %s593_s24, %s928_s11 }
  0x52   : > { %319 = vmatprep.subr.mxu0 %v304_v5  ;;  %v288_v13 = vld [vmem:[#allocation5 + $0x128] sm:$0xff]  ;;  %v287_v14 = vld [vmem:[#allocation5 + $0x120] sm:$0xff]  ;;  %v305_v23 = vld [vmem:[#allocation5 + $0x1b0] sm:$0xff]  ;;  %390 = vmatprep.subr.mxu1 %v306_v21  ;;  %p925_p9 = pnand %p924_p8, %p1133_p7  ;;  %p931_p13 = scmp.lt.s32.totalorder %s929_s15, %s923_s21 }
  0x53   : > { %320 = vmatpush1.msra.mxu0 %v303_v6  ;;  %v284_v18 = vld [vmem:[#allocation5 + $0x108] sm:$0xff]  ;;  %v283_v20 = vld [vmem:[#allocation5 + $0x100] sm:$0xff]  ;;  %v302_v25 = vld [vmem:[#allocation5 + $0x198] sm:$0xff]  ;;  %391 = vmatpush1.msra.mxu1 %v305_v23 }
  0x54   : > { %321 = vmatprep.subr.mxu0 %v300_v7  ;;  %v280_v22 = vld [vmem:[#allocation5 + $0xe8] sm:$0xff]  ;;  %v279_v24 = vld [vmem:[#allocation5 + $0xe0] sm:$0xff]  ;;  %v301_v27 = vld [vmem:[#allocation5 + $0x190] sm:$0xff]  ;;  %392 = vmatprep.subr.mxu1 %v302_v25  ;;  %p926_p11 = pneg %p925_p9  ;;  %p932_p0 = por %p931_p13, %p930_p2 }
  0x55   : > { %322 = vmatpush1.msra.mxu0 %v299_v8  ;;  %v276_v26 = vld [vmem:[#allocation5 + $0xc8] sm:$0xff]  ;;  %v275_v28 = vld [vmem:[#allocation5 + $0xc0] sm:$0xff]  ;;  %v298_v29 = vld [vmem:[#allocation5 + $0x178] sm:$0xff]  ;;  %393 = vmatpush1.msra.mxu1 %v301_v27 }
  0x56   : > { %323 = vmatprep.subr.mxu0 %v296_v9  ;;  %v272_v30 = vld [vmem:[#allocation5 + $0xa8] sm:$0xff]  ;;  %v297_v31 = vld [vmem:[#allocation5 + $0x170] sm:$0xff]  ;;  %v271_v32 = vld [vmem:[#allocation5 + $0xa0] sm:$0xff]  ;;  %394 = vmatprep.subr.mxu1 %v298_v29  ;;  %p933_p5 = pnand %p932_p0, %p926_p11 }
  0x57   : > { %324 = vmatpush1.msra.mxu0 %v295_v10  ;;  %v294_v33 = vld [vmem:[#allocation5 + $0x158] sm:$0xff]  ;;  %v268_v34 = vld [vmem:[#allocation5 + $0x88] sm:$0xff]  ;;  %v293_v35 = vld [vmem:[#allocation5 + $0x150] sm:$0xff]  ;;  %395 = vmatpush1.msra.mxu1 %v297_v31 }
  0x58   : > { %325 = vmatprep.subr.mxu0 %v292_v11  ;;  %v267_v36 = vld [vmem:[#allocation5 + $0x80] sm:$0xff]  ;;  %v290_v37 = vld [vmem:[#allocation5 + $0x138] sm:$0xff]  ;;  %v264_v38 = vld [vmem:[#allocation5 + $0x68] sm:$0xff]  ;;  %396 = vmatprep.subr.mxu1 %v294_v33 }
  0x59   : > { %326 = vmatpush1.msra.mxu0 %v291_v12  ;;  %v289_v39 = vld [vmem:[#allocation5 + $0x130] sm:$0xff]  ;;  %v263_v40 = vld [vmem:[#allocation5 + $0x60] sm:$0xff]  ;;  %397 = vmatpush1.msra.mxu1 %v293_v35  ;;  %v286_v41 = vld [vmem:[#allocation5 + $0x118] sm:$0xff] }
  0x5a   : > { %327 = vmatprep.subr.mxu0 %v288_v13  ;;  %v260_v42 = vld [vmem:[#allocation5 + $0x48] sm:$0xff]  ;;  %398 = vmatprep.subr.mxu1 %v290_v37  ;;  %v285_v43 = vld [vmem:[#allocation5 + $0x110] sm:$0xff]  ;;  %v259_v44 = vld [vmem:[#allocation5 + $0x40] sm:$0xff] }
  0x5b   : > { %328 = vmatpush1.msra.mxu0 %v287_v14  ;;  %399 = vmatpush1.msra.mxu1 %v289_v39  ;;  %v282_v45 = vld [vmem:[#allocation5 + $0xf8] sm:$0xff]  ;;  %v256_v46 = vld [vmem:[#allocation5 + $0x28] sm:$0xff]  ;;  %v281_v47 = vld [vmem:[#allocation5 + $0xf0] sm:$0xff] }
  0x5c   : > { %329 = vmatprep.subr.mxu0 %v284_v18  ;;  %400 = vmatprep.subr.mxu1 %v286_v41  ;;  %v255_v48 = vld [vmem:[#allocation5 + $0x20] sm:$0xff]  ;;  %v278_v49 = vld [vmem:[#allocation5 + $0xd8] sm:$0xff]  ;;  %v252_v50 = vld [vmem:[#allocation5 + $0x8] sm:$0xff] }
  0x5d   : > { %330 = vmatpush1.msra.mxu0 %v283_v20  ;;  %401 = vmatpush1.msra.mxu1 %v285_v43  ;;  %v277_v51 = vld [vmem:[#allocation5 + $0xd0] sm:$0xff]  ;;  %v251_v52 = vld [vmem:[#allocation5] sm:$0xff]  ;;  %v274_v53 = vld [vmem:[#allocation5 + $0xb8] sm:$0xff] }
  0x5e   : > { %331 = vmatprep.subr.mxu0 %v280_v22  ;;  %402 = vmatprep.subr.mxu1 %v282_v45  ;;  %v250_v54 = vld [vmem:[%s1166_s5] sm:$0xff]  ;;  %v503_v6 = vld [vmem:[#allocation7 + $0xe8] sm:$0xff]  ;;  %v502_v8 = vld [vmem:[#allocation7 + $0xe0] sm:$0xff] }
  0x5f   : > { %332 = vmatpush1.msra.mxu0 %v279_v24  ;;  %403 = vmatpush1.msra.mxu1 %v281_v47  ;;  %v273_v55 = vld [vmem:[#allocation5 + $0xb0] sm:$0xff]  ;;  %v270_v56 = vld [vmem:[#allocation5 + $0x98] sm:$0xff]  ;;  %v487_v7 = vld [vmem:[#allocation7 + $0x68] sm:$0xff] }
  0x60   : > { %333 = vmatprep.subr.mxu0 %v276_v26  ;;  %404 = vmatprep.subr.mxu1 %v278_v49  ;;  %v269_v57 = vld [vmem:[#allocation5 + $0x90] sm:$0xff]  ;;  %v266_v58 = vld [vmem:[#allocation5 + $0x78] sm:$0xff]  ;;  %v486_v9 = vld [vmem:[#allocation7 + $0x60] sm:$0xff] }
  0x61   : > { %334 = vmatpush1.msra.mxu0 %v275_v28  ;;  %405 = vmatpush1.msra.mxu1 %v277_v51  ;;  %v265_v59 = vld [vmem:[#allocation5 + $0x70] sm:$0xff]  ;;  %v262_v60 = vld [vmem:[#allocation5 + $0x58] sm:$0xff]  ;;  %v499_v14 = vld [vmem:[#allocation7 + $0xc8] sm:$0xff] }
  0x62   : > { %335 = vmatprep.subr.mxu0 %v272_v30  ;;  %406 = vmatprep.subr.mxu1 %v274_v53  ;;  %v261_v61 = vld [vmem:[#allocation5 + $0x50] sm:$0xff]  ;;  %v258_v62 = vld [vmem:[#allocation5 + $0x38] sm:$0xff]  ;;  %v483_v15 = vld [vmem:[#allocation7 + $0x48] sm:$0xff] }
  0x63   : > { %336 = vmatpush1.msra.mxu0 %v271_v32  ;;  %407 = vmatpush1.msra.mxu1 %v273_v55  ;;  %v257_v63 = vld [vmem:[#allocation5 + $0x30] sm:$0xff]  ;;  %v254_v0 = vld [vmem:[#allocation5 + $0x18] sm:$0xff]  ;;  %v498_v16 = vld [vmem:[#allocation7 + $0xc0] sm:$0xff] }
  0x64   : > { %337 = vmatprep.subr.mxu0 %v268_v34  ;;  %408 = vmatprep.subr.mxu1 %v270_v56  ;;  %v253_v1 = vld [vmem:[#allocation5 + $0x10] sm:$0xff]  ;;  %v505_v2 = vld [vmem:[#allocation7 + $0xf8] sm:$0xff]  ;;  %v482_v17 = vld [vmem:[#allocation7 + $0x40] sm:$0xff] }
  0x65   : > { %338 = vmatpush1.msra.mxu0 %v267_v36  ;;  %409 = vmatpush1.msra.mxu1 %v269_v57  ;;  %v489_v3 = vld [vmem:[#allocation7 + $0x78] sm:$0xff]  ;;  %v504_v4 = vld [vmem:[#allocation7 + $0xf0] sm:$0xff]  ;;  %v495_v22 = vld [vmem:[#allocation7 + $0xa8] sm:$0xff] }
  0x66   : > { %339 = vmatprep.subr.mxu0 %v264_v38  ;;  %410 = vmatprep.subr.mxu1 %v266_v58  ;;  %v488_v5 = vld [vmem:[#allocation7 + $0x70] sm:$0xff]  ;;  %v501_v10 = vld [vmem:[#allocation7 + $0xd8] sm:$0xff]  ;;  %v479_v23 = vld [vmem:[#allocation7 + $0x28] sm:$0xff] }
  0x67   : > { %340 = vmatpush1.msra.mxu0 %v263_v40  ;;  %411 = vmatpush1.msra.mxu1 %v265_v59  ;;  %v485_v11 = vld [vmem:[#allocation7 + $0x58] sm:$0xff]  ;;  %v500_v12 = vld [vmem:[#allocation7 + $0xd0] sm:$0xff]  ;;  %v494_v24 = vld [vmem:[#allocation7 + $0xa0] sm:$0xff] }
  0x68   : > { %341 = vmatprep.subr.mxu0 %v260_v42  ;;  %412 = vmatprep.subr.mxu1 %v262_v60  ;;  %v484_v13 = vld [vmem:[#allocation7 + $0x50] sm:$0xff]  ;;  %v497_v18 = vld [vmem:[#allocation7 + $0xb8] sm:$0xff]  ;;  %v478_v25 = vld [vmem:[#allocation7 + $0x20] sm:$0xff] }
  0x69   : > { %342 = vmatpush1.msra.mxu0 %v259_v44  ;;  %413 = vmatpush1.msra.mxu1 %v261_v61  ;;  %v481_v19 = vld [vmem:[#allocation7 + $0x38] sm:$0xff]  ;;  %v496_v20 = vld [vmem:[#allocation7 + $0xb0] sm:$0xff]  ;;  %v491_v30 = vld [vmem:[#allocation7 + $0x88] sm:$0xff] }
  0x6a   : > { %343 = vmatprep.subr.mxu0 %v256_v46  ;;  %414 = vmatprep.subr.mxu1 %v258_v62  ;;  %v480_v21 = vld [vmem:[#allocation7 + $0x30] sm:$0xff]  ;;  %v493_v26 = vld [vmem:[#allocation7 + $0x98] sm:$0xff]  ;;  %v475_v31 = vld [vmem:[#allocation7 + $0x8] sm:$0xff] }
  0x6b   : > { %344 = vmatpush1.msra.mxu0 %v255_v48  ;;  %415 = vmatpush1.msra.mxu1 %v257_v63  ;;  %v477_v27 = vld [vmem:[#allocation7 + $0x18] sm:$0xff]  ;;  %v492_v28 = vld [vmem:[#allocation7 + $0x90] sm:$0xff]  ;;  %v490_v32 = vld [vmem:[#allocation7 + $0x80] sm:$0xff] }
  0x6c   : > { %345 = vmatprep.subr.mxu0 %v252_v50  ;;  %416 = vmatprep.subr.mxu1 %v254_v0  ;;  %v476_v29 = vld [vmem:[#allocation7 + $0x10] sm:$0xff]  ;;  %v474_v33 = vld [vmem:[#allocation7] sm:$0xff] }
  0x6d   : > { %346 = vmatpush1.msra.mxu0 %v251_v52  ;;  %417 = vmatpush1.msra.mxu1 %v253_v1 }
  0x6e   : > { %380 = vmatmul.mubr.f32.vlgmr.msra.gmra.mxu0 %v250_v54  ;;  %451 = vmatmul.mubr.f32.vlgmr.msra.gmra.mxu1 %v250_v54 }
  0x6f   : > { %712 = vmatprep.subr.mxu0 %v505_v2 }
  0x70   : > { %713 = vmatpush3.msra.mxu0 %v489_v3 }
  0x71   : > { %714 = vmatprep.subr.mxu0 %v504_v4 }
  0x72   : > { %715 = vmatpush3.msra.mxu0 %v488_v5 }
  0x73   : > { %716 = vmatprep.subr.mxu0 %v503_v6 }
  0x74   : > { %717 = vmatpush3.msra.mxu0 %v487_v7 }
  0x75   : > { %718 = vmatprep.subr.mxu0 %v502_v8 }
  0x76   : > { %719 = vmatpush3.msra.mxu0 %v486_v9 }
  0x77   : > { %720 = vmatprep.subr.mxu0 %v501_v10 }
  0x78   : > { %721 = vmatpush3.msra.mxu0 %v485_v11 }
  0x79   : > { %722 = vmatprep.subr.mxu0 %v500_v12 }
  0x7a   : > { %723 = vmatpush3.msra.mxu0 %v484_v13 }
  0x7b   : > { %724 = vmatprep.subr.mxu0 %v499_v14 }
  0x7c   : > { %725 = vmatpush3.msra.mxu0 %v483_v15 }
  0x7d   : > { %726 = vmatprep.subr.mxu0 %v498_v16 }
  0x7e   : > { %727 = vmatpush3.msra.mxu0 %v482_v17 }
  0x7f   : > { %728 = vmatprep.subr.mxu0 %v497_v18 }
  0x80   : > { %729 = vmatpush3.msra.mxu0 %v481_v19 }
  0x81   : > { %730 = vmatprep.subr.mxu0 %v496_v20 }
  0x82   : > { %731 = vmatpush3.msra.mxu0 %v480_v21 }
  0x83   : > { %732 = vmatprep.subr.mxu0 %v495_v22 }
  0x84   : > { %733 = vmatpush3.msra.mxu0 %v479_v23 }
  0x85   : > { %734 = vmatprep.subr.mxu0 %v494_v24 }
  0x86   : > { %735 = vmatpush3.msra.mxu0 %v478_v25 }
  0x87   : > { %736 = vmatprep.subr.mxu0 %v493_v26 }
  0x88   : > { %737 = vmatpush3.msra.mxu0 %v477_v27 }
  0x89   : > { %738 = vmatprep.subr.mxu0 %v492_v28 }
  0x8a   : > { %739 = vmatpush3.msra.mxu0 %v476_v29 }
  0x8b   : > { %740 = vmatprep.subr.mxu0 %v491_v30 }
  0x8c   : > { %741 = vmatpush3.msra.mxu0 %v475_v31 }
  0x8d   : > { %742 = vmatprep.subr.mxu0 %v490_v32 }
  0x8e   : > { %743 = vmatpush3.msra.mxu0 %v474_v33 }
 0x12e   : > { %v381_v34 = vpop.f32.mrf.mxu0  ;;  %v452_v43 = vpop.f32.mrf.mxu1 }
 0x12f   : > { %v706_v35 = vmul.f32 -1.442695, %v381_v34 }
 0x130   : > { %v383_v36 = vpop.f32.mrf.mxu0  ;;  %v454_v47 = vpop.f32.mrf.mxu1 }
 0x131   : > { %835 = vpow2.f32 %v706_v35  ;;  %v707_v37 = vmul.f32 -1.442695, %v383_v36 }
 0x133   : > { %837 = vpow2.f32 %v707_v37 }
 0x13e   : > { %v836_v38 = vpop.eup %835 }
 0x13f   : > { %v463_v39 = vadd.f32 1.0, %v836_v38 }
 0x140   : > { %v838_v40 = vpop.eup %837 }
 0x141   : > { %839 = vrcp.f32 %v463_v39  ;;  %v464_v41 = vadd.f32 1.0, %v838_v40 }
 0x143   : > { %841 = vrcp.f32 %v464_v41 }
 0x14e   : > { %v840_v42 = vpop.eup %839 }
 0x14f   : > { %v469_v45 = vmul.f32 %v840_v42, %v381_v34 }
 0x150   : > { %v842_v44 = vpop.eup %841 }
 0x151   : > { %v470_v46 = vmul.f32 %v842_v44, %v383_v36  ;;  %v471_v49 = vmul.f32 %v469_v45, %v452_v43 }
 0x153   : > { %v472_v48 = vmul.f32 %v470_v46, %v454_v47 }
 0x155   : > { %570 = vmatprep.mubr.f32.mxu0 %v472_v48 }
 0x156   : > { %571 = vmatmul.mubr.f32.vlgmr.msra.gmra.mxu0 %v471_v49 }
 0x216   : > { %v744_v50 = vpop.f32.mrf.mxu0 }
 0x218   : > { %v745_v51 = vpop.f32.mrf.mxu0 }
 0x219   : > { %v746_v52 = vadd.f32 %v745_v51, %v744_v50 }
 0x21b   : > { %577 = vst [vmem:[%s242_s22] sm:$0xff] %v746_v52 }
 0x21c   : > { %936 = shalt.err (!%p933_p5)
}
 0x21d   : > { %s937_s18 = scalar_lea.hbm %s590_s8, 128  ;;  %s941_s28 = scalar_lea.hbm %s1222_s3, 256 }
 0x21e   : > { %p938_p10 = scmp.ne.s32.totalorder %s590_s8, %s937_s18  ;;  %p942_p6 = scmp.lt.s32.totalorder %s590_s8, %s1222_s3 }
 0x21f   : > { %p943_p12 = scmp.lt.s32.totalorder %s941_s28, %s937_s18 }
 0x220   : > { %p939_p1 = pnand %p938_p10, %p1133_p7 }
 0x221   : > { %p944_p3 = por %p943_p12, %p942_p6 }
 0x222   : > { %p940_p4 = pneg %p939_p1 }
 0x224   : > { %p945_p8 = pnand %p944_p3, %p940_p4 }
 0x226   : > { %948 = shalt.err (!%p945_p8)
}
 0x227   : > { %757 = dma.vmem_to_hbm [thread:$0]  (%p1133_p7), %s593_s24, 128, %s590_s8, %s579_s9  }
 0x228 PF: > { %s604_s5 = sand.u32 1, %s987_s12   ;;  %p1236_p9 = scmp.ne.s32.totalorder %s1229_s23, 0 }
 0x229   : > { %p1237_p11 = scmp.ge.s32.totalorder %s1007_s17, 2  ;;  %s605_s20 = scalar_lea.sflag [#allocation4], %s604_s5 }
 0x22b   : > { %p771_p2 = pnand %p1237_p11, %p1236_p9 }
 0x22d   : > { %p772_p13 = pneg %p771_p2 }
 0x22f   : > { %982 = dma.done.wait (%p772_p13), %s605_s20, 128  }
 0x230   : > { %984 = vsyncadd (%p772_p13), %s605_s20, 4294967168  ;;  %s20_s17 = sadd.s32 1, %s1007_s17   ;;  %s1238_s12 = smov %s991_s13 }
 0x231   : > { %p17_p0 = scmp.ge.s32.totalorder %s20_s17, 4   ;;  %s1239_s13 = smov %s995_s14 }
 0x232   : > { %s1240_s14 = smov %s1142_s4  ;;  %s1241_s15 = smov %s1003_s16 }
 0x233   : > { %s1242_s16 = smov %s1244_s19  ;;  %19 = sbr.rel (!%p17_p0) target bundleno = 7 (0x7), region = 91 }
 0x238   :  { %610 = vsyncpa [#allocation3], 1 }
 0x239   :  { %612 = vsyncpa [#allocation3 + $0x1], 1 }
 0x23a   :  { %613 = vsyncpa [#allocation6], 1 }
 0x23b   :  { %614 = vsyncpa [#allocation4], 1 }
 0x23c   :  { %616 = vsyncpa [#allocation4 + $0x1], 1 }

</bundles_post_ra>
